<compile_context>
chip_gen: v7x
topology: tpu7x:2x2x1
jax: 0.10.0
libtpu: 0.0.40
codegen_flags: <defaults>
</compile_context>

<pallas_src>
import functools

import jax
import jax.numpy as jnp
from jax import lax
from jax.experimental import pallas as pl
from jax.experimental.pallas import tpu as pltpu


# ----------------------------------------------------------------------------
# Kernel 1: tiled dense layer  y = x @ W^T + b   (PyTorch nn.Linear layout)
# ----------------------------------------------------------------------------
def _linear_kernel(x_ref, w_ref, b_ref, o_ref, acc_ref):
    @pl.when(pl.program_id(2) == 0)
    def _():
        acc_ref[...] = jnp.zeros_like(acc_ref)

    # Contract the K axis of x:(tm,tk) with the K axis of w:(tn,tk) directly —
    # no in-kernel .T; the MXU handles the RHS-transposed contraction natively.
    acc_ref[...] += lax.dot_general(
        x_ref[...],
        w_ref[...],
        dimension_numbers=(((1,), (1,)), ((), ())),
        preferred_element_type=jnp.float32,
    )

    @pl.when(pl.program_id(2) == pl.num_programs(2) - 1)
    def _():
        o_ref[...] = (acc_ref[...] + b_ref[...].astype(jnp.float32)).astype(o_ref.dtype)


def _pick_tile(dim, candidates):
    for c in candidates:
        if dim % c == 0:
            return c
    return dim  # fall back to an untiled axis (always a legal block)


def linear(x2d, w, b):
    """y = x2d @ w.T + b with torch nn.Linear weight layout w:(O, K)."""
    M, K = x2d.shape
    O = w.shape[0]
    # Modest tiles: fits comfortably in the 32 MiB scoped VMEM of v7x with
    # double-buffering while still feeding the MXU with big blocks elsewhere.
    tm = _pick_tile(M, (512, 256, 128))
    tn = _pick_tile(O, (512, 384, 256, 128))
    tk = _pick_tile(K, (512, 384, 256, 128))
    grid = (M // tm, O // tn, K // tk)
    return pl.pallas_call(
        _linear_kernel,
        out_shape=jax.ShapeDtypeStruct((M, O), x2d.dtype),
        grid_spec=pltpu.PrefetchScalarGridSpec(
            num_scalar_prefetch=0,
            grid=grid,
            in_specs=[
                pl.BlockSpec((tm, tk), lambda i, j, k: (i, k)),
                pl.BlockSpec((tn, tk), lambda i, j, k: (j, k)),
                pl.BlockSpec((1, tn), lambda i, j, k: (0, j)),
            ],
            out_specs=pl.BlockSpec((tm, tn), lambda i, j, k: (i, j)),
            scratch_shapes=[pltpu.VMEM((tm, tn), jnp.float32)],
        ),
        compiler_params=pltpu.CompilerParams(
            dimension_semantics=("parallel", "parallel", "arbitrary"),
        ),
    )(x2d, w, b.reshape(1, O))


# ----------------------------------------------------------------------------
# Kernel 2: fused multi-head attention + output projection, one batch per step
# ----------------------------------------------------------------------------
def _attn_proj_kernel(qkv_ref, wp_ref, bp_ref, o_ref, ctx_ref, *, num_heads, scale):
    # qkv_ref: (1, N, 3E)  packed [Q | K | V] columns straight from the qkv linear
    # wp_ref : (E, E)      torch nn.Linear weight of the output projection
    # bp_ref : (1, E)
    # o_ref  : (1, N, E)   lane-dense output slab
    # ctx_ref: (N, E) f32  scratch holding the concatenated per-head context
    E = wp_ref.shape[0]
    Dh = E // num_heads

    for h in range(num_heads):  # static unroll -> static lane offsets per head
        q = qkv_ref[0, :, h * Dh:(h + 1) * Dh] * scale           # fold scale into Q
        k = qkv_ref[0, :, E + h * Dh:E + (h + 1) * Dh]
        v = qkv_ref[0, :, 2 * E + h * Dh:2 * E + (h + 1) * Dh]

        # QK^T without transposing K: contract the Dh axis of both operands.
        s = lax.dot_general(
            q, k,
            dimension_numbers=(((1,), (1,)), ((), ())),
            preferred_element_type=jnp.float32,
        )                                                         # (N, N) f32
        m = jnp.max(s, axis=-1, keepdims=True)
        p = jnp.exp(s - m)
        p = p * pl.reciprocal(jnp.sum(p, axis=-1, keepdims=True), approx=True)
        # Keep PV operands in the input dtype; accumulate in f32 on the MXU.
        ctx_ref[:, h * Dh:(h + 1) * Dh] = jnp.dot(
            p.astype(v.dtype), v, preferred_element_type=jnp.float32
        )

    # Fused output projection: (N, E) @ W_proj^T + b, written lane-dense.
    out = lax.dot_general(
        ctx_ref[...].astype(wp_ref.dtype),
        wp_ref[...],
        dimension_numbers=(((1,), (1,)), ((), ())),
        preferred_element_type=jnp.float32,
    )
    o_ref[0] = (out + bp_ref[...].astype(jnp.float32)).astype(o_ref.dtype)


def attention_proj(qkv, w_proj, b_proj, num_heads, scale):
    B, N, E3 = qkv.shape
    E = E3 // 3
    kern = functools.partial(_attn_proj_kernel, num_heads=num_heads, scale=scale)
    return pl.pallas_call(
        kern,
        out_shape=jax.ShapeDtypeStruct((B, N, E), qkv.dtype),
        grid_spec=pltpu.PrefetchScalarGridSpec(
            num_scalar_prefetch=0,
            grid=(B,),
            in_specs=[
                pl.BlockSpec((1, N, E3), lambda b: (b, 0, 0)),
                pl.BlockSpec((E, E), lambda b: (0, 0)),
                pl.BlockSpec((1, E), lambda b: (0, 0)),
            ],
            out_specs=pl.BlockSpec((1, N, E), lambda b: (b, 0, 0)),
            scratch_shapes=[pltpu.VMEM((N, E), jnp.float32)],
        ),
        compiler_params=pltpu.CompilerParams(dimension_semantics=("parallel",)),
    )(qkv, w_proj, b_proj.reshape(1, E))


# ----------------------------------------------------------------------------
# Full MultiHeadAttention forward (eval mode)
# ----------------------------------------------------------------------------
def mha_forward(x, w_qkv, b_qkv, w_proj, b_proj, num_heads):
    B, N, E = x.shape
    Dh = E // num_heads
    scale = 1.0 / (Dh ** 0.5)

    # QKV projection (tiled Pallas matmul).  reshape is layout-free.
    qkv = linear(x.reshape(B * N, E), w_qkv, b_qkv)   # (B*N, 3E)
    qkv = qkv.reshape(B, N, 3 * E)                    # free reshape, no HBM permute

    # Fused attention + output projection; per-head Q/K/V are column slices of
    # the packed qkv slab, output comes back directly as (B, N, E).
    return attention_proj(qkv, w_proj, b_proj, num_heads, scale)


# ----------------------------------------------------------------------------
# Pure-JAX reference for validation
# ----------------------------------------------------------------------------
def mha_reference(x, w_qkv, b_qkv, w_proj, b_proj, num_heads):
    B, N, E = x.shape
    Dh = E // num_heads
    scale = 1.0 / (Dh ** 0.5)
    qkv = x @ w_qkv.T + b_qkv
    qkv = qkv.reshape(B, N, 3, num_heads, Dh).transpose(2, 0, 3, 1, 4)
    q, k, v = qkv[0], qkv[1], qkv[2]
    s = jnp.einsum("bhqd,bhkd->bhqk", q, k) * scale
    p = jax.nn.softmax(s, axis=-1)
    o = jnp.einsum("bhqk,bhkd->bhqd", p, v)
    o = o.transpose(0, 2, 1, 3).reshape(B, N, E)
    return o @ w_proj.T + b_proj


if __name__ == "__main__":
    # Small shapes consistent with the module: embed_dim divisible by num_heads
    B, N, E, H = 2, 8, 32, 4

    key = jax.random.PRNGKey(0)
    k_x, k_wqkv, k_bqkv, k_wproj, k_bproj = jax.random.split(key, 5)

    x = jax.random.normal(k_x, (B, N, E), dtype=jnp.float32)
    # nn.Linear(embed_dim, 3*embed_dim): weight (3E, E), bias (3E,)
    w_qkv = jax.random.normal(k_wqkv, (3 * E, E), dtype=jnp.float32) * 0.02
    b_qkv = jax.random.normal(k_bqkv, (3 * E,), dtype=jnp.float32) * 0.02
    # nn.Linear(embed_dim, embed_dim): weight (E, E), bias (E,)
    w_proj = jax.random.normal(k_wproj, (E, E), dtype=jnp.float32) * 0.02
    b_proj = jax.random.normal(k_bproj, (E,), dtype=jnp.float32) * 0.02

    out = mha_forward(x, w_qkv, b_qkv, w_proj, b_proj, H)
    out = jax.block_until_ready(out)

    ref = mha_reference(x, w_qkv, b_qkv, w_proj, b_proj, H)
    assert out.shape == (B, N, E)
    # Tolerance accounts for the EUP approximate reciprocal in the softmax.
    assert jnp.allclose(out, ref, atol=5e-3, rtol=5e-3), "mismatch vs reference"

    print("KERNEL_OK")
</pallas_src>

<mosaic_0001>
module attributes {stable_mosaic.version = 11 : i64} {
  func.func @_linear_kernel(%arg0: i32, %arg1: i32, %arg2: i32, %arg3: memref<16x32xf32, #tpu.memory_space<vmem>>, %arg4: memref<96x32xf32, #tpu.memory_space<vmem>>, %arg5: memref<1x96xf32, #tpu.memory_space<vmem>>, %arg6: memref<16x96xf32, #tpu.memory_space<vmem>>, %arg7: memref<16x96xf32, #tpu.memory_space<vmem>>) attributes {dimension_semantics = [#tpu.dimension_semantics<parallel>, #tpu.dimension_semantics<parallel>, #tpu.dimension_semantics<arbitrary>], iteration_bounds = array<i64: 1, 1, 1>, scalar_prefetch = 0 : i64, scratch_operands = 1 : i64, tpu.core_type = #tpu.core_type<tc>, window_params = [{transform_indices = @transform_0, window_bounds = array<i64: 16, 32>}, {transform_indices = @transform_1, window_bounds = array<i64: 96, 32>}, {transform_indices = @transform_2, window_bounds = array<i64: 1, 96>}, {transform_indices = @transform_3, window_bounds = array<i64: 16, 96>}]} {
    %c0_i32 = arith.constant 0 : i32
    %0 = arith.cmpi eq, %arg2, %c0_i32 : i32
    %1 = arith.extui %0 : i1 to i32
    %c0_i32_0 = arith.constant 0 : i32
    %2 = arith.cmpi ne, %1, %c0_i32_0 : i32
    scf.if %2 {
      %cst_10 = arith.constant 0.000000e+00 : f32
      %12 = vector.broadcast %cst_10 : f32 to vector<16x96xf32>
      %c0_11 = arith.constant 0 : index
      %c0_12 = arith.constant 0 : index
      %13 = vector.load %arg7[%c0_11, %c0_12] : memref<16x96xf32, #tpu.memory_space<vmem>>, vector<16x96xf32>
      tpu.vector_store %arg7[%c0_11, %c0_12], %12 {strides = array<i32>} : memref<16x96xf32, #tpu.memory_space<vmem>>, vector<16x96xf32>,
    } else {
    }
    %c0 = arith.constant 0 : index
    %c0_1 = arith.constant 0 : index
    %3 = vector.load %arg7[%c0, %c0_1] : memref<16x96xf32, #tpu.memory_space<vmem>>, vector<16x96xf32>
    %c0_2 = arith.constant 0 : index
    %c0_3 = arith.constant 0 : index
    %4 = vector.load %arg3[%c0_2, %c0_3] : memref<16x32xf32, #tpu.memory_space<vmem>>, vector<16x32xf32>
    %c0_4 = arith.constant 0 : index
    %c0_5 = arith.constant 0 : index
    %5 = vector.load %arg4[%c0_4, %c0_5] : memref<96x32xf32, #tpu.memory_space<vmem>>, vector<96x32xf32>
    %cst = arith.constant dense<0.000000e+00> : vector<16x96xf32>
    %6 = tpu.matmul %4, %5, %cst {dimension_numbers = #tpu.dot_dimension_numbers<[1], [1], [0], [0], [0, 0, 1, 0], [], []>} : vector<16x32xf32>, vector<96x32xf32>, vector<16x96xf32> -> vector<16x96xf32>
    %7 = arith.addf %3, %6 : vector<16x96xf32>
    %c0_6 = arith.constant 0 : index
    %c0_7 = arith.constant 0 : index
    %8 = vector.load %arg7[%c0_6, %c0_7] : memref<16x96xf32, #tpu.memory_space<vmem>>, vector<16x96xf32>
    tpu.vector_store %arg7[%c0_6, %c0_7], %7 {strides = array<i32>} : memref<16x96xf32, #tpu.memory_space<vmem>>, vector<16x96xf32>,
    %c0_i32_8 = arith.constant 0 : i32
    %9 = arith.cmpi eq, %arg2, %c0_i32_8 : i32
    %10 = arith.extui %9 : i1 to i32
    %c0_i32_9 = arith.constant 0 : i32
    %11 = arith.cmpi ne, %10, %c0_i32_9 : i32
    scf.if %11 {
      %c0_10 = arith.constant 0 : index
      %c0_11 = arith.constant 0 : index
      %12 = vector.load %arg7[%c0_10, %c0_11] : memref<16x96xf32, #tpu.memory_space<vmem>>, vector<16x96xf32>
      %c0_12 = arith.constant 0 : index
      %c0_13 = arith.constant 0 : index
      %13 = vector.load %arg5[%c0_12, %c0_13] : memref<1x96xf32, #tpu.memory_space<vmem>>, vector<1x96xf32>
      %14 = vector.broadcast %13 : vector<1x96xf32> to vector<16x96xf32>
      %15 = arith.addf %12, %14 : vector<16x96xf32>
      %c0_14 = arith.constant 0 : index
      %c0_15 = arith.constant 0 : index
      %16 = vector.load %arg6[%c0_14, %c0_15] : memref<16x96xf32, #tpu.memory_space<vmem>>, vector<16x96xf32>
      tpu.vector_store %arg6[%c0_14, %c0_15], %15 {strides = array<i32>} : memref<16x96xf32, #tpu.memory_space<vmem>>, vector<16x96xf32>,
    } else {
    }
    return
  }
  func.func @transform_0(%arg0: i32, %arg1: i32, %arg2: i32) -> (i32, i32) {
    %c0_i32 = arith.constant 0 : i32
    return %arg0, %arg2 : i32, i32
  }
  func.func @transform_1(%arg0: i32, %arg1: i32, %arg2: i32) -> (i32, i32) {
    %c0_i32 = arith.constant 0 : i32
    return %arg1, %arg2 : i32, i32
  }
  func.func @transform_2(%arg0: i32, %arg1: i32, %arg2: i32) -> (i32, i32) {
    %c0_i32 = arith.constant 0 : i32
    %c0_i32_0 = arith.constant 0 : i32
    return %c0_i32, %arg1 : i32, i32
  }
  func.func @transform_3(%arg0: i32, %arg1: i32, %arg2: i32) -> (i32, i32) {
    %c0_i32 = arith.constant 0 : i32
    return %arg0, %arg1 : i32, i32
  }
}

</mosaic_0001>

<bundles_post_ra>
// kernel: tpu_custom_call.1
= control target key start
LH: loop header
LB: loop body
LE: loop exit
PB: predicated region body
PF: predicated region fallthrough
CT: control target
= control target key end

     0   :  { %vm38_vm0 = vcmask 261120   ;;  %vm19_vm1 = vcmask 785408   ;;  %v313_v6 = vmov 0.0   ;;  %s432_s0 = inlined_call_operand.vmem [shape: f32[16,32], index: 0, kind: input, shape index: {}]   ;;  %s433_s1 = inlined_call_operand.vmem [shape: f32[96,32], index: 1, kind: input, shape index: {}]   ;;  %s434_s2 = inlined_call_operand.vmem [shape: f32[1,96], index: 2, kind: input, shape index: {}]   ;;  %s435_s3 = inlined_call_operand.hbm [shape: f32[16,96], index: 3, kind: output, shape index: {}]  }
   0x1   :  { %v26_v0 = vld [vmem:[%s433_s1] sm:$0xff]  ;;  %v27_v1 = vld [vmem:[%s433_s1 + $0x8] sm:$0xff]  ;;  %v28_v2 = vld [vmem:[%s433_s1 + $0x10] sm:$0xff]  ;;  %21 = vst.msk [vmem:[#allocation2 + $0x8] sm:$0xff] %vm19_vm1, %v313_v6 }
   0x2   :  { %v249_v3 = vpack.c.bf16 %v27_v1, %v26_v0  ;;  %vm348_vm2 = vmpackc.low %vm38_vm0, %vm38_vm0  ;;  %v29_v5 = vld [vmem:[%s433_s1 + $0x18] sm:$0xff]  ;;  %20 = vst.msk [vmem:[#allocation2] sm:$0xff] %vm19_vm1, %v313_v6  ;;  %v24_v8 = vld [vmem:[%s432_s0] sm:$0xff] }
   0x3   :  { %v255_v7 = vpack.c.bf16 %v29_v5, %v28_v2  ;;  %246 = vmatprep.mubr.msk.f32.mxu0 %vm38_vm0, %v24_v8 }
   0x4   :  { %251 = vmatprep.subr.msk.bf16.mxu0 %vm348_vm2, %v249_v3 }
   0x5   :  { %254 = vmatpush3.bf16.xpose.msk.msra.mxu0 %vm348_vm2, %v249_v3 }
   0x6   :  { %257 = vmatprep.subr.msk.bf16.mxu0 %vm348_vm2, %v255_v7 }
   0x7   :  { %8 = vsyncpa [#allocation4], 0  ;;  %v30_v9 = vld [vmem:[%s433_s1 + $0x20] sm:$0xff]  ;;  %v31_v10 = vld [vmem:[%s433_s1 + $0x28] sm:$0xff]  ;;  %s314_s14 = smov [#allocation3]  }
   0x8   :  { %v261_v11 = vpack.c.bf16 %v31_v10, %v30_v9  ;;  %v32_v12 = vld [vmem:[%s433_s1 + $0x30] sm:$0xff]  ;;  %v33_v13 = vld [vmem:[%s433_s1 + $0x38] sm:$0xff]  ;;  %v34_v15 = vld [vmem:[%s433_s1 + $0x40] sm:$0xff]  ;;  %s182_s15 = sshll.u32 %s314_s14, 4  ;;  %s183_s15 = int_to_ptr.vmem [resolvable:$true] %s182_s15 }
   0x9   :  { %v267_v14 = vpack.c.bf16 %v33_v13, %v32_v12  ;;  %v35_v16 = vld [vmem:[%s433_s1 + $0x48] sm:$0xff]  ;;  %v36_v18 = vld [vmem:[%s433_s1 + $0x50] sm:$0xff]  ;;  %v37_v19 = vld [vmem:[%s433_s1 + $0x58] sm:$0xff]  ;;  %p294_p1 = scmp.lt.s32.totalorder %s183_s15, %s183_s15 }
   0xa   :  { %v273_v17 = vpack.c.bf16 %v35_v16, %v34_v15  ;;  %v279_v20 = vpack.c.bf16 %v37_v19, %v36_v18  ;;  %v25_v21 = vld [vmem:[%s432_s0 + $0x8] sm:$0xff]  ;;  %v22_v23 = vld [vmem:[#allocation2] sm:$0xff]  ;;  %s289_s0 = scalar_lea.vmem %s183_s15, 256 }
   0xb   :  { %v23_v22 = vld [vmem:[#allocation2 + $0x8] sm:$0xff]  ;;  %v207_v28 = vld [vmem:[%s434_s2] ss:$0 sm:$0xff]  ;;  %p290_p0 = scmp.ne.s32.totalorder %s183_s15, %s289_s0  ;;  %p295_p2 = scmp.lt.s32.totalorder %s289_s0, %s289_s0 }
   0xd   :  { %260 = vmatpush3.bf16.xpose.msk.msra.mxu0 %vm348_vm2, %v255_v7  ;;  %p296_p3 = por %p295_p2, %p294_p1 }
   0xe   :  { %263 = vmatprep.subr.msk.bf16.mxu0 %vm348_vm2, %v261_v11 }
   0xf   :  { %p297_p4 = pnand %p296_p3, %p290_p0 }
  0x15   :  { %266 = vmatpush3.bf16.xpose.msk.msra.mxu0 %vm348_vm2, %v261_v11 }
  0x16   :  { %269 = vmatprep.subr.msk.bf16.mxu0 %vm348_vm2, %v267_v14 }
  0x1d   :  { %272 = vmatpush3.bf16.xpose.msk.msra.mxu0 %vm348_vm2, %v267_v14 }
  0x1e   :  { %275 = vmatprep.subr.msk.bf16.mxu0 %vm348_vm2, %v273_v17 }
  0x25   :  { %278 = vmatpush3.bf16.xpose.msk.msra.mxu0 %vm348_vm2, %v273_v17 }
  0x26   :  { %281 = vmatprep.subr.msk.bf16.mxu0 %vm348_vm2, %v279_v20 }
  0x2d   :  { %284 = vmatpush3.bf16.xpose.msk.msra.mxu0 %vm348_vm2, %v279_v20 }
  0x34   :  { %247 = vmatmul.mubr.msk.f32.vlgmr.msra.gmra.mrb[0].mxu0 %vm38_vm0, %v25_v21 }
 0x107   :  { %v248_v24 = vpop.f32.mrb[0].mxu0 }
 0x108   :  { %v157_v25 = vadd.f32 %v248_v24, %v23_v22  ;;  %v147_v26 = vpop.f32.mrb[1].mxu0 }
 0x109   :  { %v156_v27 = vadd.f32 %v147_v26, %v22_v23 }
 0x10a   :  { %160 = vst.msk [vmem:[#allocation2 + $0x8] sm:$0xff] %vm19_vm1, %v157_v25 }
 0x10b   :  { %159 = vst.msk [vmem:[#allocation2] sm:$0xff] %vm19_vm1, %v156_v27 }
 0x111   :  { %v165_v29 = vld [vmem:[#allocation2 + $0x8] sm:$0xff] }
 0x112   :  { %v164_v30 = vld [vmem:[#allocation2] sm:$0xff]  ;;  %v174_v31 = vadd.f32 %v207_v28, %v165_v29 }
 0x113   :  { %v173_v32 = vadd.f32 %v207_v28, %v164_v30 }
 0x114   :  { %176 = vst.msk [vmem:[#allocation3 + $0x8] sm:$0xff] %vm19_vm1, %v174_v31 }
 0x115   :  { %175 = vst.msk [vmem:[#allocation3] sm:$0xff] %vm19_vm1, %v173_v32 }
 0x116   :  { %300 = shalt.err (!%p297_p4)
}
 0x117   :  { %s301_s17 = scalar_lea.hbm %s435_s3, 256 }
 0x118   :  { %p302_p5 = scmp.ne.s32.totalorder %s435_s3, %s301_s17  ;;  %p305_p6 = scmp.lt.u32.totalorder %s301_s17, %s435_s3 }
 0x11a   :  { %p307_p7 = pnand %p305_p6, %p302_p5 }
 0x11c   :  { %310 = shalt.err (!%p307_p7)
}
 0x11d   :  { %s315_s22 = smov 128   ;;  %s316_s23 = smov 8  }
 0x11e   :  { %188 = dma.vmem_to_hbm [thread:$0]  %s183_s15, 256, %s435_s3, [#allocation4], %s315_s22, %s315_s22, %s316_s23  }
 0x11f   :  { %311 = dma.done.wait [#allocation4], 256  }
 0x120   :  { %312 = vsyncadd [#allocation4], 4294967040 }
 0x121   :  { %192 = vsyncpa [#allocation4], 1 }

</bundles_post_ra>
